<compile_context>
chip_gen: v5e
topology: v5e:2x2
jax: 0.10.0
libtpu: 0.0.40
codegen_flags: <defaults>
</compile_context>

<pallas_src>
import functools
import math

import jax
import jax.numpy as jnp
from jax.experimental import pallas as pl
from jax.experimental.pallas import tpu as pltpu

LN_EPS = 1e-5  # torch.nn.LayerNorm default


def _full_spec(shape):
    """Whole-array block with a constant block index (not re-DMA'd across grid)."""
    nd = len(shape)

    def idx(*_):
        return (0,) * nd

    return pl.BlockSpec(shape, idx)


def _vmem_limit_bytes():
    # v5e/v6e: 128 MiB physical VMEM -> ~100 MiB budget; v7x: 64 MiB -> ~51 MiB.
    try:
        cap = pltpu.get_tpu_info().vmem_capacity_bytes
    except Exception:
        cap = 128 * 1024 * 1024
    return min(int(cap) * 4 // 5, 100 * 1024 * 1024)


# --------------------------- K/V projection kernel ---------------------------
def kv_project_kernel(x_ref, wk_ref, bk_ref, wv_ref, bv_ref, kt_ref, v_ref,
                      *, n_heads):
    """Once per batch: K/V projections, split per head, K pre-transposed."""
    x = x_ref[0]                                       # (S, H), compute dtype
    S, H = x.shape
    HD = H // n_heads
    cd = kt_ref.dtype
    k = (jnp.dot(x, wk_ref[...], preferred_element_type=jnp.float32)
         + bk_ref[...]).astype(cd)                     # (S, H)
    v = (jnp.dot(x, wv_ref[...], preferred_element_type=jnp.float32)
         + bv_ref[...]).astype(cd)                     # (S, H)
    for h in range(n_heads):                           # once per batch, not per tile
        sl = slice(h * HD, (h + 1) * HD)
        kt_ref[0, h] = k[:, sl].T                      # (HD, S): K stored transposed
        v_ref[0, h] = v[:, sl]                         # (S, HD)


def _kv_project(x_cd, wk, bk, wv, bv, *, n_heads, compute_dtype, vmem_limit):
    B, S, H = x_cd.shape
    HD = H // n_heads
    kernel = functools.partial(kv_project_kernel, n_heads=n_heads)
    return pl.pallas_call(
        kernel,
        out_shape=(jax.ShapeDtypeStruct((B, n_heads, HD, S), compute_dtype),
                   jax.ShapeDtypeStruct((B, n_heads, S, HD), compute_dtype)),
        grid_spec=pltpu.PrefetchScalarGridSpec(
            num_scalar_prefetch=0,
            grid=(B,),
            in_specs=[pl.BlockSpec((1, S, H), lambda b: (b, 0, 0)),
                      _full_spec((H, H)), _full_spec((1, H)),
                      _full_spec((H, H)), _full_spec((1, H))],
            out_specs=[pl.BlockSpec((1, n_heads, HD, S), lambda b: (b, 0, 0, 0)),
                       pl.BlockSpec((1, n_heads, S, HD), lambda b: (b, 0, 0, 0))]),
        compiler_params=pltpu.CompilerParams(
            dimension_semantics=("parallel",),
            vmem_limit_bytes=vmem_limit),
    )(x_cd, wk, bk, wv, bv)


# ------------------------------ main decoder kernel --------------------------
def decoder_layer_kernel(
    # inputs
    xq_ref, kts_ref, vs_ref, kte_ref, ve_ref, tbias_ref, sbias_ref,
    swq_ref, sbq_ref, swo_ref, sbo_ref, ln_s_g_ref, ln_s_b_ref,
    ewq_ref, ebq_ref, ewo_ref, ebo_ref, ln_e_g_ref, ln_e_b_ref,
    w1_ref, b1_ref, w2_ref, b2_ref, ln_f_g_ref, ln_f_b_ref,
    # outputs
    out_ref, self_attn_ref, enc_attn_ref,
    *, n_heads, compute_dtype,
):
    xq = xq_ref[0]                          # (TQ, H) f32 query rows / residual
    TQ, H = xq.shape
    HD = H // n_heads
    cd = compute_dtype
    inv_scale = 1.0 / math.sqrt(HD)
    inv_h = 1.0 / H

    # Additive mask biases (precomputed as bf16 0 / -1e10 in the wrapper).
    self_bias = tbias_ref[0, 0].astype(jnp.float32)    # (TQ, S)
    src_bias = sbias_ref[0, 0].astype(jnp.float32)     # (1, Ss)

    # batched NN dot_general: (NH, M, K) x (NH, K, N) -> (NH, M, N)
    bnn = (((2,), (1,)), ((0,), (0,)))

    def linear(v, w_ref, b_ref):
        # compute-dtype operands, f32 accumulation on the MXU.
        return jnp.dot(v.astype(cd), w_ref[...],
                       preferred_element_type=jnp.float32) + b_ref[...]

    def layer_norm(v, g_ref, b_ref):
        mu = jnp.sum(v, axis=-1, keepdims=True) * inv_h
        d = v - mu
        var = jnp.sum(d * d, axis=-1, keepdims=True) * inv_h
        return d * jax.lax.rsqrt(var + LN_EPS) * g_ref[...] + b_ref[...]

    def mha(q_rows, kT, v, bias, wq_ref, bq_ref, wo3_ref, bo_ref, attn_ref):
        # kT: (NH, HD, Sk), v: (NH, Sk, HD) — precomputed once per batch.
        q = (linear(q_rows, wq_ref, bq_ref) * inv_scale).astype(cd)   # (TQ, H)
        # Split into heads along a new leading (batch) axis — no lane reshapes.
        q3 = jnp.stack([q[:, h * HD:(h + 1) * HD] for h in range(n_heads)],
                       axis=0)                                        # (NH, TQ, HD)
        energy = jax.lax.dot_general(q3, kT, bnn,
                                     preferred_element_type=jnp.float32)
        energy = energy + bias                 # one add; broadcasts over heads
        energy = energy - jnp.max(energy, axis=-1, keepdims=True)
        p = jnp.exp(energy)
        # Exact normalization so returned attention rows sum to 1 (torch softmax).
        attn = p / jnp.sum(p, axis=-1, keepdims=True)                 # (NH, TQ, Sk)
        attn_ref[0] = attn.astype(attn_ref.dtype)
        ctx = jax.lax.dot_general(attn.astype(cd), v, bnn,
                                  preferred_element_type=jnp.float32)  # (NH, TQ, HD)
        # Per-head output projection summed over heads: avoids the lane
        # relayout of ctx back to (TQ, H) and any masked sub-128 stores.
        o = jax.lax.dot_general(ctx.astype(cd), wo3_ref[...], bnn,
                                preferred_element_type=jnp.float32)    # (NH, TQ, H)
        return jnp.sum(o, axis=0) + bo_ref[...]

    # --- self attention + norm ----------------------------------------------
    ax = mha(xq, kts_ref[0], vs_ref[0], self_bias,
             swq_ref, sbq_ref, swo_ref, sbo_ref, self_attn_ref)
    x1 = layer_norm(xq + ax, ln_s_g_ref, ln_s_b_ref)

    # --- encoder (cross) attention + norm -------------------------------------
    ax = mha(x1, kte_ref[0], ve_ref[0], src_bias,
             ewq_ref, ebq_ref, ewo_ref, ebo_ref, enc_attn_ref)
    x2 = layer_norm(x1 + ax, ln_e_g_ref, ln_e_b_ref)

    # --- position-wise feed-forward + norm -------------------------------------
    # TODO(synk): chunk over pf_dim for very large PF on v7x (64 MiB VMEM).
    hidden = jnp.maximum(linear(x2, w1_ref, b1_ref), 0.0)
    ff = linear(hidden, w2_ref, b2_ref)
    x3 = layer_norm(x2 + ff, ln_f_g_ref, ln_f_b_ref)
    out_ref[0] = x3.astype(out_ref.dtype)


def decoder_layer(x, trg_mask, src_enc, src_mask, params, *,
                  n_heads, compute_dtype=jnp.bfloat16, attn_dtype=None,
                  q_tile=128):
    B, S, H = x.shape
    Bs, Ss, Hs = src_enc.shape
    assert (Bs, Hs) == (B, H)
    assert H % n_heads == 0
    HD = H // n_heads
    PF = params["w1"].shape[1]
    tq = min(q_tile, S)
    assert S % tq == 0, "sequence length must be divisible by the query tile"
    n_q = S // tq
    cd = compute_dtype
    attn_dtype = cd if attn_dtype is None else attn_dtype
    vmem_limit = _vmem_limit_bytes()

    # K/V projections once per batch (never per query tile); inputs pre-cast
    # to compute_dtype (halves their DMA bytes).
    k_self, v_self = _kv_project(
        x.astype(cd), params["self_wk"].astype(cd), params["self_bk"],
        params["self_wv"].astype(cd), params["self_bv"],
        n_heads=n_heads, compute_dtype=cd, vmem_limit=vmem_limit)
    k_enc, v_enc = _kv_project(
        src_enc.astype(cd), params["enc_wk"].astype(cd), params["enc_bk"],
        params["enc_wv"].astype(cd), params["enc_bv"],
        n_heads=n_heads, compute_dtype=cd, vmem_limit=vmem_limit)

    # Additive mask biases in bf16 (2x less DMA than f32 0/1 masks, and no
    # in-kernel compare/select).
    tbias = jnp.where(trg_mask == 0, jnp.float32(-1e10), jnp.float32(0.0)
                      ).astype(jnp.bfloat16)                       # (B,1,S,S)
    sbias = jnp.where(src_mask == 0, jnp.float32(-1e10), jnp.float32(0.0)
                      ).astype(jnp.bfloat16)                       # (B,1,1,Ss)

    # Weights cast once outside the grid; wo pre-reshaped per head.
    swq = params["self_wq"].astype(cd)
    swo3 = params["self_wo"].reshape(n_heads, HD, H).astype(cd)
    ewq = params["enc_wq"].astype(cd)
    ewo3 = params["enc_wo"].reshape(n_heads, HD, H).astype(cd)
    w1 = params["w1"].astype(cd)
    w2 = params["w2"].astype(cd)

    in_specs = [
        pl.BlockSpec((1, tq, H), lambda b, q: (b, q, 0)),              # x query tile
        pl.BlockSpec((1, n_heads, HD, S), lambda b, q: (b, 0, 0, 0)),  # K_self^T
        pl.BlockSpec((1, n_heads, S, HD), lambda b, q: (b, 0, 0, 0)),  # V_self
        pl.BlockSpec((1, n_heads, HD, Ss), lambda b, q: (b, 0, 0, 0)),  # K_enc^T
        pl.BlockSpec((1, n_heads, Ss, HD), lambda b, q: (b, 0, 0, 0)),  # V_enc
        pl.BlockSpec((1, 1, tq, S), lambda b, q: (b, 0, q, 0)),        # trg bias
        pl.BlockSpec((1, 1, 1, Ss), lambda b, q: (b, 0, 0, 0)),        # src bias
        _full_spec((H, H)), _full_spec((1, H)),                        # self wq, bq
        _full_spec((n_heads, HD, H)), _full_spec((1, H)),              # self wo3, bo
        _full_spec((1, H)), _full_spec((1, H)),                        # self_attn_norm
        _full_spec((H, H)), _full_spec((1, H)),                        # enc wq, bq
        _full_spec((n_heads, HD, H)), _full_spec((1, H)),              # enc wo3, bo
        _full_spec((1, H)), _full_spec((1, H)),                        # enc_attn_norm
        _full_spec((H, PF)), _full_spec((1, PF)),                      # ff w1, b1
        _full_spec((PF, H)), _full_spec((1, H)),                       # ff w2, b2
        _full_spec((1, H)), _full_spec((1, H)),                        # ff_norm
    ]
    out_specs = [
        pl.BlockSpec((1, tq, H), lambda b, q: (b, q, 0)),
        pl.BlockSpec((1, n_heads, tq, S), lambda b, q: (b, 0, q, 0)),
        pl.BlockSpec((1, n_heads, tq, Ss), lambda b, q: (b, 0, q, 0)),
    ]

    kernel = functools.partial(decoder_layer_kernel,
                               n_heads=n_heads, compute_dtype=cd)

    return pl.pallas_call(
        kernel,
        out_shape=(
            jax.ShapeDtypeStruct((B, S, H), jnp.float32),
            jax.ShapeDtypeStruct((B, n_heads, S, S), attn_dtype),
            jax.ShapeDtypeStruct((B, n_heads, S, Ss), attn_dtype),
        ),
        grid_spec=pltpu.PrefetchScalarGridSpec(
            num_scalar_prefetch=0,
            grid=(B, n_q),
            in_specs=in_specs,
            out_specs=out_specs),
        compiler_params=pltpu.CompilerParams(
            dimension_semantics=("parallel", "parallel"),
            vmem_limit_bytes=vmem_limit),
    )(
        x, k_self, v_self, k_enc, v_enc, tbias, sbias,
        swq, params["self_bq"], swo3, params["self_bo"],
        params["ln_self_g"], params["ln_self_b"],
        ewq, params["enc_bq"], ewo3, params["enc_bo"],
        params["ln_enc_g"], params["ln_enc_b"],
        w1, params["b1"], w2, params["b2"],
        params["ln_ff_g"], params["ln_ff_b"],
    )


# ------------------------- pure-JAX reference (torch semantics) -------------
def _mha_ref(q_in, kv_in, mask, p, pre, n_heads):
    B, Sq, H = q_in.shape
    Sk = kv_in.shape[1]
    HD = H // n_heads
    lin = lambda v, w, b: v @ w + b
    Q = lin(q_in, p[pre + "wq"], p[pre + "bq"]).reshape(B, Sq, n_heads, HD).transpose(0, 2, 1, 3)
    K = lin(kv_in, p[pre + "wk"], p[pre + "bk"]).reshape(B, Sk, n_heads, HD).transpose(0, 2, 1, 3)
    V = lin(kv_in, p[pre + "wv"], p[pre + "bv"]).reshape(B, Sk, n_heads, HD).transpose(0, 2, 1, 3)
    energy = jnp.einsum("bhqd,bhkd->bhqk", Q, K) / jnp.sqrt(jnp.float32(HD))
    energy = jnp.where(mask == 0, -1e10, energy)
    attn = jax.nn.softmax(energy, axis=-1)
    ctx = jnp.einsum("bhqk,bhkd->bhqd", attn, V).transpose(0, 2, 1, 3).reshape(B, Sq, H)
    return lin(ctx, p[pre + "wo"], p[pre + "bo"]), attn


def decoder_layer_ref(x, trg_mask, src_enc, src_mask, p, *, n_heads):
    def ln(v, g, b):
        mu = jnp.mean(v, axis=-1, keepdims=True)
        var = jnp.mean((v - mu) ** 2, axis=-1, keepdims=True)
        return (v - mu) * jax.lax.rsqrt(var + LN_EPS) * g + b

    ax, self_attn = _mha_ref(x, x, trg_mask, p, "self_", n_heads)
    x1 = ln(x + ax, p["ln_self_g"], p["ln_self_b"])
    ax, enc_attn = _mha_ref(x1, src_enc, src_mask, p, "enc_", n_heads)
    x2 = ln(x1 + ax, p["ln_enc_g"], p["ln_enc_b"])
    ff = jnp.maximum(x2 @ p["w1"] + p["b1"], 0.0) @ p["w2"] + p["b2"]
    x3 = ln(x2 + ff, p["ln_ff_g"], p["ln_ff_b"])
    return x3, self_attn, enc_attn


# ------------------------------ main -----------------------------------------
if __name__ == "__main__":
    B, S, SS, H, NH, PF = 2, 8, 16, 32, 4, 64

    key = jax.random.PRNGKey(0)
    keys = jax.random.split(key, 32)
    ki = iter(range(32))

    def w(shape, scale=0.1):
        return (scale * jax.random.normal(keys[next(ki)], shape)).astype(jnp.float32)

    params = {}
    for pre in ("self_", "enc_"):
        for nm in ("q", "k", "v", "o"):
            params[pre + "w" + nm] = w((H, H))
            params[pre + "b" + nm] = w((1, H))
    params.update({
        "ln_self_g": jnp.ones((1, H), jnp.float32), "ln_self_b": jnp.zeros((1, H), jnp.float32),
        "ln_enc_g": jnp.ones((1, H), jnp.float32), "ln_enc_b": jnp.zeros((1, H), jnp.float32),
        "ln_ff_g": jnp.ones((1, H), jnp.float32), "ln_ff_b": jnp.zeros((1, H), jnp.float32),
        "w1": w((H, PF)), "b1": w((1, PF)),
        "w2": w((PF, H)), "b2": w((1, H)),
    })

    x = jax.random.normal(keys[next(ki)], (B, S, H), dtype=jnp.float32)
    src_enc = jax.random.normal(keys[next(ki)], (B, SS, H), dtype=jnp.float32)

    # target mask: causal, plus batch 1 has its last key position padded out
    causal = jnp.tril(jnp.ones((S, S), jnp.float32))
    trg_pad = jnp.ones((B, 1, 1, S), jnp.float32).at[1, 0, 0, -1].set(0.0)
    trg_mask = causal[None, None] * trg_pad                     # (B, 1, S, S)
    # source (padding) mask: batch 1 masks its last 3 source positions
    src_mask = jnp.ones((B, 1, 1, SS), jnp.float32).at[1, 0, 0, -3:].set(0.0)

    out_r, sa_r, ea_r = decoder_layer_ref(
        x, trg_mask, src_enc, src_mask, params, n_heads=NH)

    # f32 compute path: verifies forward semantics tightly.
    out, sa, ea = jax.block_until_ready(decoder_layer(
        x, trg_mask, src_enc, src_mask, params,
        n_heads=NH, compute_dtype=jnp.float32))
    assert jnp.allclose(out, out_r, atol=2e-3, rtol=2e-3), "f32 output mismatch"
    assert jnp.allclose(sa, sa_r, atol=2e-3, rtol=2e-3), "f32 self_attn mismatch"
    assert jnp.allclose(ea, ea_r, atol=2e-3, rtol=2e-3), "f32 enc_attn mismatch"

    # bf16 MXU path (default): bf16 operands/attn maps, f32 accumulation.
    out, sa, ea = jax.block_until_ready(decoder_layer(
        x, trg_mask, src_enc, src_mask, params, n_heads=NH))
    assert jnp.allclose(out, out_r, atol=5e-2, rtol=5e-2), "bf16 output mismatch"
    assert jnp.allclose(sa.astype(jnp.float32), sa_r, atol=2e-2, rtol=2e-2), "bf16 self_attn mismatch"
    assert jnp.allclose(ea.astype(jnp.float32), ea_r, atol=2e-2, rtol=2e-2), "bf16 enc_attn mismatch"

    # TODO(synk): ConcreteGate (pruning=True) depends on undefined GATE_* module
    # globals; this kernel implements the pruning=False / eval configuration.
    print("KERNEL_OK")
</pallas_src>

<mosaic_0001>
module attributes {stable_mosaic.version = 11 : i64} {
  func.func @kv_project_kernel(%arg0: i32, %arg1: memref<1x8x32xf32, #tpu.memory_space<vmem>>, %arg2: memref<32x32xf32, #tpu.memory_space<vmem>>, %arg3: memref<1x32xf32, #tpu.memory_space<vmem>>, %arg4: memref<32x32xf32, #tpu.memory_space<vmem>>, %arg5: memref<1x32xf32, #tpu.memory_space<vmem>>, %arg6: memref<1x4x8x8xf32, #tpu.memory_space<vmem>>, %arg7: memref<1x4x8x8xf32, #tpu.memory_space<vmem>>) attributes {dimension_semantics = [#tpu.dimension_semantics<parallel>], iteration_bounds = array<i64: 2>, scalar_prefetch = 0 : i64, scratch_operands = 0 : i64, tpu.core_type = #tpu.core_type<tc>, window_params = [{transform_indices = @transform_0, window_bounds = array<i64: 1, 8, 32>}, {pipeline_mode = #tpu.pipeline_mode<synchronous>, transform_indices = @transform_1, window_bounds = array<i64: 32, 32>}, {pipeline_mode = #tpu.pipeline_mode<synchronous>, transform_indices = @transform_2, window_bounds = array<i64: 1, 32>}, {pipeline_mode = #tpu.pipeline_mode<synchronous>, transform_indices = @transform_3, window_bounds = array<i64: 32, 32>}, {pipeline_mode = #tpu.pipeline_mode<synchronous>, transform_indices = @transform_4, window_bounds = array<i64: 1, 32>}, {transform_indices = @transform_5, window_bounds = array<i64: 1, 4, 8, 8>}, {transform_indices = @transform_6, window_bounds = array<i64: 1, 4, 8, 8>}]} {
    %c0 = arith.constant 0 : index
    %c0_0 = arith.constant 0 : index
    %c0_1 = arith.constant 0 : index
    %0 = vector.load %arg1[%c0, %c0_0, %c0_1] : memref<1x8x32xf32, #tpu.memory_space<vmem>>, vector<1x8x32xf32>
    %1 = vector.shape_cast %0 : vector<1x8x32xf32> to vector<8x32xf32>
    %c0_2 = arith.constant 0 : index
    %c0_3 = arith.constant 0 : index
    %2 = vector.load %arg2[%c0_2, %c0_3] : memref<32x32xf32, #tpu.memory_space<vmem>>, vector<32x32xf32>
    %cst = arith.constant dense<0.000000e+00> : vector<8x32xf32>
    %3 = tpu.matmul %1, %2, %cst {dimension_numbers = #tpu.dot_dimension_numbers<[1], [0], [0], [1], [0, 0, 1, 1], [], []>} : vector<8x32xf32>, vector<32x32xf32>, vector<8x32xf32> -> vector<8x32xf32>
    %c0_4 = arith.constant 0 : index
    %c0_5 = arith.constant 0 : index
    %4 = vector.load %arg3[%c0_4, %c0_5] : memref<1x32xf32, #tpu.memory_space<vmem>>, vector<1x32xf32>
    %5 = vector.broadcast %4 : vector<1x32xf32> to vector<8x32xf32>
    %6 = arith.addf %3, %5 : vector<8x32xf32>
    %c0_6 = arith.constant 0 : index
    %c0_7 = arith.constant 0 : index
    %7 = vector.load %arg4[%c0_6, %c0_7] : memref<32x32xf32, #tpu.memory_space<vmem>>, vector<32x32xf32>
    %cst_8 = arith.constant dense<0.000000e+00> : vector<8x32xf32>
    %8 = tpu.matmul %1, %7, %cst_8 {dimension_numbers = #tpu.dot_dimension_numbers<[1], [0], [0], [1], [0, 0, 1, 1], [], []>} : vector<8x32xf32>, vector<32x32xf32>, vector<8x32xf32> -> vector<8x32xf32>
    %c0_9 = arith.constant 0 : index
    %c0_10 = arith.constant 0 : index
    %9 = vector.load %arg5[%c0_9, %c0_10] : memref<1x32xf32, #tpu.memory_space<vmem>>, vector<1x32xf32>
    %10 = vector.broadcast %9 : vector<1x32xf32> to vector<8x32xf32>
    %11 = arith.addf %8, %10 : vector<8x32xf32>
    %12 = vector.extract_strided_slice %6 {offsets = [0, 0], sizes = [8, 8], strides = [1, 1]} : vector<8x32xf32> to vector<8x8xf32>
    %13 = tpu.transpose %12, [1, 0] : vector<8x8xf32> -> vector<8x8xf32>
    %c0_11 = arith.constant 0 : index
    %c0_12 = arith.constant 0 : index
    %c0_13 = arith.constant 0 : index
    %c0_14 = arith.constant 0 : index
    %14 = vector.load %arg6[%c0_11, %c0_12, %c0_13, %c0_14] : memref<1x4x8x8xf32, #tpu.memory_space<vmem>>, vector<1x1x8x8xf32>
    %15 = vector.shape_cast %14 : vector<1x1x8x8xf32> to vector<8x8xf32>
    %16 = vector.shape_cast %13 : vector<8x8xf32> to vector<1x1x8x8xf32>
    tpu.vector_store %arg6[%c0_11, %c0_12, %c0_13, %c0_14], %16 {strides = array<i32>} : memref<1x4x8x8xf32, #tpu.memory_space<vmem>>, vector<1x1x8x8xf32>,
    %17 = vector.extract_strided_slice %11 {offsets = [0, 0], sizes = [8, 8], strides = [1, 1]} : vector<8x32xf32> to vector<8x8xf32>
    %c0_15 = arith.constant 0 : index
    %c0_16 = arith.constant 0 : index
    %c0_17 = arith.constant 0 : index
    %c0_18 = arith.constant 0 : index
    %18 = vector.load %arg7[%c0_15, %c0_16, %c0_17, %c0_18] : memref<1x4x8x8xf32, #tpu.memory_space<vmem>>, vector<1x1x8x8xf32>
    %19 = vector.shape_cast %18 : vector<1x1x8x8xf32> to vector<8x8xf32>
    %20 = vector.shape_cast %17 : vector<8x8xf32> to vector<1x1x8x8xf32>
    tpu.vector_store %arg7[%c0_15, %c0_16, %c0_17, %c0_18], %20 {strides = array<i32>} : memref<1x4x8x8xf32, #tpu.memory_space<vmem>>, vector<1x1x8x8xf32>,
    %21 = vector.extract_strided_slice %6 {offsets = [0, 8], sizes = [8, 8], strides = [1, 1]} : vector<8x32xf32> to vector<8x8xf32>
    %22 = tpu.transpose %21, [1, 0] : vector<8x8xf32> -> vector<8x8xf32>
    %c0_19 = arith.constant 0 : index
    %c1 = arith.constant 1 : index
    %c0_20 = arith.constant 0 : index
    %c0_21 = arith.constant 0 : index
    %23 = vector.load %arg6[%c0_19, %c1, %c0_20, %c0_21] : memref<1x4x8x8xf32, #tpu.memory_space<vmem>>, vector<1x1x8x8xf32>
    %24 = vector.shape_cast %23 : vector<1x1x8x8xf32> to vector<8x8xf32>
    %25 = vector.shape_cast %22 : vector<8x8xf32> to vector<1x1x8x8xf32>
    tpu.vector_store %arg6[%c0_19, %c1, %c0_20, %c0_21], %25 {strides = array<i32>} : memref<1x4x8x8xf32, #tpu.memory_space<vmem>>, vector<1x1x8x8xf32>,
    %26 = vector.extract_strided_slice %11 {offsets = [0, 8], sizes = [8, 8], strides = [1, 1]} : vector<8x32xf32> to vector<8x8xf32>
    %c0_22 = arith.constant 0 : index
    %c1_23 = arith.constant 1 : index
    %c0_24 = arith.constant 0 : index
    %c0_25 = arith.constant 0 : index
    %27 = vector.load %arg7[%c0_22, %c1_23, %c0_24, %c0_25] : memref<1x4x8x8xf32, #tpu.memory_space<vmem>>, vector<1x1x8x8xf32>
    %28 = vector.shape_cast %27 : vector<1x1x8x8xf32> to vector<8x8xf32>
    %29 = vector.shape_cast %26 : vector<8x8xf32> to vector<1x1x8x8xf32>
    tpu.vector_store %arg7[%c0_22, %c1_23, %c0_24, %c0_25], %29 {strides = array<i32>} : memref<1x4x8x8xf32, #tpu.memory_space<vmem>>, vector<1x1x8x8xf32>,
    %30 = vector.extract_strided_slice %6 {offsets = [0, 16], sizes = [8, 8], strides = [1, 1]} : vector<8x32xf32> to vector<8x8xf32>
    %31 = tpu.transpose %30, [1, 0] : vector<8x8xf32> -> vector<8x8xf32>
    %c0_26 = arith.constant 0 : index
    %c2 = arith.constant 2 : index
    %c0_27 = arith.constant 0 : index
    %c0_28 = arith.constant 0 : index
    %32 = vector.load %arg6[%c0_26, %c2, %c0_27, %c0_28] : memref<1x4x8x8xf32, #tpu.memory_space<vmem>>, vector<1x1x8x8xf32>
    %33 = vector.shape_cast %32 : vector<1x1x8x8xf32> to vector<8x8xf32>
    %34 = vector.shape_cast %31 : vector<8x8xf32> to vector<1x1x8x8xf32>
    tpu.vector_store %arg6[%c0_26, %c2, %c0_27, %c0_28], %34 {strides = array<i32>} : memref<1x4x8x8xf32, #tpu.memory_space<vmem>>, vector<1x1x8x8xf32>,
    %35 = vector.extract_strided_slice %11 {offsets = [0, 16], sizes = [8, 8], strides = [1, 1]} : vector<8x32xf32> to vector<8x8xf32>
    %c0_29 = arith.constant 0 : index
    %c2_30 = arith.constant 2 : index
    %c0_31 = arith.constant 0 : index
    %c0_32 = arith.constant 0 : index
    %36 = vector.load %arg7[%c0_29, %c2_30, %c0_31, %c0_32] : memref<1x4x8x8xf32, #tpu.memory_space<vmem>>, vector<1x1x8x8xf32>
    %37 = vector.shape_cast %36 : vector<1x1x8x8xf32> to vector<8x8xf32>
    %38 = vector.shape_cast %35 : vector<8x8xf32> to vector<1x1x8x8xf32>
    tpu.vector_store %arg7[%c0_29, %c2_30, %c0_31, %c0_32], %38 {strides = array<i32>} : memref<1x4x8x8xf32, #tpu.memory_space<vmem>>, vector<1x1x8x8xf32>,
    %39 = vector.extract_strided_slice %6 {offsets = [0, 24], sizes = [8, 8], strides = [1, 1]} : vector<8x32xf32> to vector<8x8xf32>
    %40 = tpu.transpose %39, [1, 0] : vector<8x8xf32> -> vector<8x8xf32>
    %c0_33 = arith.constant 0 : index
    %c3 = arith.constant 3 : index
    %c0_34 = arith.constant 0 : index
    %c0_35 = arith.constant 0 : index
    %41 = vector.load %arg6[%c0_33, %c3, %c0_34, %c0_35] : memref<1x4x8x8xf32, #tpu.memory_space<vmem>>, vector<1x1x8x8xf32>
    %42 = vector.shape_cast %41 : vector<1x1x8x8xf32> to vector<8x8xf32>
    %43 = vector.shape_cast %40 : vector<8x8xf32> to vector<1x1x8x8xf32>
    tpu.vector_store %arg6[%c0_33, %c3, %c0_34, %c0_35], %43 {strides = array<i32>} : memref<1x4x8x8xf32, #tpu.memory_space<vmem>>, vector<1x1x8x8xf32>,
    %44 = vector.extract_strided_slice %11 {offsets = [0, 24], sizes = [8, 8], strides = [1, 1]} : vector<8x32xf32> to vector<8x8xf32>
    %c0_36 = arith.constant 0 : index
    %c3_37 = arith.constant 3 : index
    %c0_38 = arith.constant 0 : index
    %c0_39 = arith.constant 0 : index
    %45 = vector.load %arg7[%c0_36, %c3_37, %c0_38, %c0_39] : memref<1x4x8x8xf32, #tpu.memory_space<vmem>>, vector<1x1x8x8xf32>
    %46 = vector.shape_cast %45 : vector<1x1x8x8xf32> to vector<8x8xf32>
    %47 = vector.shape_cast %44 : vector<8x8xf32> to vector<1x1x8x8xf32>
    tpu.vector_store %arg7[%c0_36, %c3_37, %c0_38, %c0_39], %47 {strides = array<i32>} : memref<1x4x8x8xf32, #tpu.memory_space<vmem>>, vector<1x1x8x8xf32>,
    return
  }
  func.func @transform_0(%arg0: i32) -> (i32, i32, i32) {
    %c0_i32 = arith.constant 0 : i32
    %c0_i32_0 = arith.constant 0 : i32
    %c0_i32_1 = arith.constant 0 : i32
    return %arg0, %c0_i32, %c0_i32_0 : i32, i32, i32
  }
  func.func @transform_1(%arg0: i32) -> (i32, i32) {
    %c0_i32 = arith.constant 0 : i32
    %c0_i32_0 = arith.constant 0 : i32
    %c0_i32_1 = arith.constant 0 : i32
    return %c0_i32, %c0_i32_0 : i32, i32
  }
  func.func @transform_2(%arg0: i32) -> (i32, i32) {
    %c0_i32 = arith.constant 0 : i32
    %c0_i32_0 = arith.constant 0 : i32
    %c0_i32_1 = arith.constant 0 : i32
    return %c0_i32, %c0_i32_0 : i32, i32
  }
  func.func @transform_3(%arg0: i32) -> (i32, i32) {
    %c0_i32 = arith.constant 0 : i32
    %c0_i32_0 = arith.constant 0 : i32
    %c0_i32_1 = arith.constant 0 : i32
    return %c0_i32, %c0_i32_0 : i32, i32
  }
  func.func @transform_4(%arg0: i32) -> (i32, i32) {
    %c0_i32 = arith.constant 0 : i32
    %c0_i32_0 = arith.constant 0 : i32
    %c0_i32_1 = arith.constant 0 : i32
    return %c0_i32, %c0_i32_0 : i32, i32
  }
  func.func @transform_5(%arg0: i32) -> (i32, i32, i32, i32) {
    %c0_i32 = arith.constant 0 : i32
    %c0_i32_0 = arith.constant 0 : i32
    %c0_i32_1 = arith.constant 0 : i32
    %c0_i32_2 = arith.constant 0 : i32
    return %arg0, %c0_i32, %c0_i32_0, %c0_i32_1 : i32, i32, i32, i32
  }
  func.func @transform_6(%arg0: i32) -> (i32, i32, i32, i32) {
    %c0_i32 = arith.constant 0 : i32
    %c0_i32_0 = arith.constant 0 : i32
    %c0_i32_1 = arith.constant 0 : i32
    %c0_i32_2 = arith.constant 0 : i32
    return %arg0, %c0_i32, %c0_i32_0, %c0_i32_1 : i32, i32, i32, i32
  }
}

</mosaic_0001>

<bundles_post_ra>
// kernel: tpu_custom_call.1
= control target key start
LH: loop header
LB: loop body
LE: loop exit
PB: predicated region body
PF: predicated region fallthrough
CT: control target
= control target key end

     0   :  { %s1239_s0 = inlined_call_operand.hbm [shape: f32[2,8,32], index: 0, kind: input, shape index: {}]   ;;  %s1240_s1 = inlined_call_operand.hbm [shape: f32[32,32], index: 1, kind: input, shape index: {}]   ;;  %s1241_s2 = inlined_call_operand.vmem [shape: f32[1,32], index: 2, kind: input, shape index: {}]   ;;  %s1242_s3 = inlined_call_operand.hbm [shape: f32[32,32], index: 3, kind: input, shape index: {}]   ;;  %s1243_s4 = inlined_call_operand.vmem [shape: f32[1,32], index: 4, kind: input, shape index: {}]   ;;  %s1244_s5 = inlined_call_operand.hbm [shape: f32[2,4,8,8], index: 5, kind: output, shape index: {0}]   ;;  %s1245_s6 = inlined_call_operand.hbm [shape: f32[2,4,8,8], index: 6, kind: output, shape index: {1}]  }
   0x1   :  { %1246 = sst [smem:[#allocation15_spill]] %s1240_s1 }
   0x2   :  { %12 = vsyncpa [#allocation3], 0 }
   0x3   :  { %14 = vsyncpa [#allocation3 + $0x1], 0 }
   0x4   :  { %15 = vsyncpa [#allocation6], 0 }
   0x5   :  { %16 = vsyncpa [#allocation4], 0 }
   0x6   :  { %18 = vsyncpa [#allocation4 + $0x1], 0 }
   0x7   :  { %19 = vsyncpa [#allocation10], 0 }
   0x8   :  { %21 = vsyncpa [#allocation10 + $0x1], 0  ;;  %s1051_s21 = smov 0   ;;  %s1053_s22 = smov 0  }
   0x9   :  { %s1055_s23 = smov 0   ;;  %s1057_s24 = smov 0  }
   0xa LB: > { %s1247_s1 = sld [smem:[#allocation15_spill]]  ;;  %s1075_s28 = sadd.s32 4294967295, %s1005_s24   ;;  %s1005_s24 = sphi %s1057_s24, %s1258_s24   ;;  %s1001_s23 = sphi %s1055_s23, %s1257_s23   ;;  %s997_s22 = sphi %s1053_s22, %s1256_s22   ;;  %s993_s21 = sphi %s1051_s21, %s1255_s21  }
   0xb   : > { %p701_p0 = scmp.ge.s32.totalorder %s1005_s24, 1  ;;  %p48_p1 = scmp.eq.s32.totalorder %s1075_s28, 0 }
   0xc   : > { %p194_p2 = scmp.lt.s32.totalorder %s1005_s24, 3  ;;  %s1007_s30 = smov [#allocation5]  }
   0xd   : > { %s207_s7 = sshll.u32 %s1007_s30, 4  ;;  %s222_s10 = sshll.u32 %s1242_s3, 4  ;;  %s208_s7 = int_to_ptr.vmem [resolvable:$true] %s207_s7  ;;  %s223_s10 = int_to_ptr.hbm [resolvable:$true] %s222_s10 }
   0xe   : > { %p1080_p3 = pnand %p701_p0, %p194_p2  ;;  %s1008_s11 = smov [#allocation7]  }
   0xf   : > { %s224_s12 = sshll.u32 %s1008_s11, 4  ;;  %s1009_s13 = smov 128   ;;  %s225_s12 = int_to_ptr.vmem [resolvable:$true] %s224_s12 }
  0x10   : > { %s205_s27 = sshll.u32 %s1247_s1, 4  ;;  %p745_p4 = pneg %p1080_p3  ;;  %s206_s27 = int_to_ptr.hbm [resolvable:$true] %s205_s27 }
  0x11   : > { %s1010_s14 = smov 8   ;;  %s700_s15 = sadd.s32 4294967294, %s1005_s24  }
  0x12   : > { %p746_p6 = pnand %p745_p4, %p48_p1  ;;  %s1094_s16 = sadd.s32 1, %s1005_s24  }
  0x13   : > { %s31_s17 = ssub.s32 %s1005_s24, %s1094_s16  ;;  %s34_s18 = sadd.s32 1, %s1001_s23 }
  0x14   : > { %748 = dma.hbm_to_vmem [thread:$0]  (!%p746_p6), %s206_s27, 512, %s208_s7, [#allocation6], %s1009_s13, %s1009_s13, %s1010_s14  }
  0x15   : > { %751 = dma.hbm_to_vmem [thread:$0]  (!%p746_p6), %s223_s10, 512, %s225_s12, [#allocation6], %s1009_s13, %s1009_s13, %s1010_s14  }
  0x16   : > { %p32_p7 = scmp.eq.s32.totalorder %s31_s17, 0  ;;  %p41_p8 = scmp.ne.s32.totalorder %s1001_s23, %s997_s22 }
  0x17   : > { %p42_p9 = scmp.eq.s32.totalorder %s1005_s24, 0  ;;  %p47_p10 = scmp.ne.s32.totalorder %s997_s22, %s993_s21 }
  0x18   : > { %s1105_s19 = scalar_select %p32_p7, %s1001_s23, %s34_s18  }
  0x19   : > { %p1107_p11 = por %p42_p9, %p41_p8  ;;  %p1113_p12 = por %p48_p1, %p47_p10 }
  0x1a   : > { %p155_p13 = scmp.eq.s32.totalorder %s1075_s28, 1  ;;  %p161_p0 = scmp.eq.s32.totalorder %s700_s15, 1 }
  0x1b   : > { %p765_p2 = scmp.lt.s32.totalorder %s1005_s24, 2  ;;  %s241_s26 = sand.u32 1, %s1001_s23  }
  0x1c   : > { %p1120_p4 = por %p155_p13, %p41_p8  ;;  %p1124_p6 = por %p161_p0, %p47_p10 }
  0x1d   : > { %s705_s7 = sshll.u32 %s241_s26, 3  ;;  %s706_s8 = sshll.u32 %s1005_s24, 3 }
  0x1e   : > { %s249_s11 = scalar_lea.hbm %s1239_s0, %s706_s8  ;;  %s245_s12 = scalar_lea.vmem [#allocation2], %s705_s7 }
  0x1f   : > { %s253_s13 = sshll.u32 %s245_s12, 4  ;;  %s251_s14 = sshll.u32 %s249_s11, 4  ;;  %s254_s13 = int_to_ptr.vmem [resolvable:$true] %s253_s13  ;;  %s252_s14 = int_to_ptr.hbm [resolvable:$true] %s251_s14 }
  0x20   : > { %p1134_p7 = pnand %p765_p2, %p1107_p11  ;;  %s242_s17 = scalar_lea.sflag [#allocation3], %s241_s26 }
  0x21   : > { %s873_s18 = sshra.s32 %s252_s14, 4  ;;  %s880_s9 = scalar_lea.hbm %s1239_s0, 16  ;;  %s874_s18 = int_to_ptr.hbm [resolvable:$true] %s873_s18 }
  0x22   : > { %s875_s1 = scalar_lea.hbm %s874_s18, 8  ;;  %p877_p9 = pneg %p1134_p7 }
  0x23   : > { %p876_p8 = scmp.ne.s32.totalorder %s874_s18, %s875_s1  ;;  %p881_p11 = scmp.lt.s32.totalorder %s874_s18, %s1239_s0 }
  0x24   : > { %p882_p0 = scmp.lt.s32.totalorder %s880_s9, %s875_s1 }
  0x25   : > { %p878_p10 = pnand %p877_p9, %p876_p8 }
  0x26   : > { %p883_p2 = por %p882_p0, %p881_p11 }
  0x27   : > { %p879_p13 = pneg %p878_p10 }
  0x29   : > { %p884_p5 = pnand %p883_p2, %p879_p13 }
  0x2b   : > { %887 = shalt.err (!%p884_p5)
}
  0x2c   : > { %755 = dma.hbm_to_vmem [thread:$0]  (!%p1134_p7), %s252_s14, 128, %s254_s13, %s242_s17  }
  0x2d   : > { %262 = sbr.rel (%p1080_p3) target bundleno = 590 (0x24e), region = 40  ;;  %s1151_s26 = sand.u32 (!%p1080_p3), 1, %s997_s22  }
  0x2e   : > { %s708_s11 = sshll.u32 (!%p1080_p3), %s1151_s26, 3  ;;  %s265_s12 = scalar_lea.sflag (!%p1080_p3), [#allocation3], %s1151_s26 }
  0x2f   : > { %s268_s7 = scalar_lea.vmem (!%p1080_p3), [#allocation2], %s708_s11 }
  0x32   : > { %976 = dma.done.wait (%p1113_p12), %s265_s12, 128  }
  0x33   : > { %978 = vsyncadd (%p1113_p12), %s265_s12, 4294967168 }
  0x34   : > { %980 = dma.done.wait (%p48_p1), [#allocation6], 1024  }
  0x35   : > { %982 = vsyncadd (%p48_p1), [#allocation6], 4294966272  ;;  %v317_v0 = vld [vmem:[#allocation5 + $0x18] sm:$0xff]  ;;  %v316_v2 = vld [vmem:[#allocation5 + $0x10] sm:$0xff]  ;;  %vm322_vm0 = vcmask 261120   ;;  %s711_s1 = sshll.u32 %s1151_s26, 5 }
  0x36   : > { %v349_v1 = vld [vmem:[#allocation7 + $0x18] sm:$0xff]  ;;  %338 = vmatpush.msra.mxu0 %v317_v0  ;;  %v348_v3 = vld [vmem:[#allocation7 + $0x10] sm:$0xff]  ;;  %v315_v4 = vld [vmem:[#allocation5 + $0x8] sm:$0xff]  ;;  %vm406_vm1 = vcmask 64512   ;;  %s1170_s15 = scalar_lea.vmem [#allocation9], %s711_s1  ;;  %s1011_s17 = smov 120  }
  0x37   : > { %366 = vmatpush.msra.mxu1 %v349_v1  ;;  %v347_v5 = vld [vmem:[#allocation7 + $0x8] sm:$0xff]  ;;  %v314_v6 = vld [vmem:[#allocation5] sm:$0xff]  ;;  %v313_v8 = vld [vmem:[%s268_s7] sm:$0xff]  ;;  %s1012_s18 = smov 112   ;;  %s1013_s8 = smov 104  }
  0x38   : > { %339 = vmatpush.msra.mxu0 %v316_v2  ;;  %v346_v7 = vld [vmem:[#allocation7] sm:$0xff]  ;;  %v811_v9 = vld [vmem:[%s1241_s2] ss:$0 sm:$0xff]  ;;  %s1176_s9 = scalar_lea.vmem [#allocation8], %s711_s1  ;;  %s729_s10 = sshll.u32 %s1075_s28, 5 }
  0x39   : > { %367 = vmatpush.msra.mxu1 %v348_v3  ;;  %v812_v10 = vld [vmem:[%s1243_s4] ss:$0 sm:$0xff]  ;;  %s571_s12 = scalar_lea.hbm %s1245_s6, %s729_s10  ;;  %s572_s7 = sshll.u32 %s1170_s15, 4  ;;  %s573_s7 = int_to_ptr.vmem [resolvable:$true] %s572_s7 }
  0x3a   : > { %340 = vmatpush.msra.mxu0 %v315_v4  ;;  %s574_s1 = sshll.u32 %s571_s12, 4  ;;  %s543_s29 = scalar_lea.sflag [#allocation10], %s1151_s26  ;;  %s575_s1 = int_to_ptr.hbm [resolvable:$true] %s574_s1 }
  0x3b   : > { %368 = vmatpush.msra.mxu1 %v347_v5  ;;  %s917_s25 = sshra.s32 %s575_s1, 4  ;;  %s918_s25 = int_to_ptr.hbm [resolvable:$true] %s917_s25 }
  0x3c   : > { %341 = vmatpush.msra.mxu0 %v314_v6  ;;  %s919_s13 = scalar_lea.hbm %s918_s25, 32  ;;  %p924_p12 = scmp.lt.s32.totalorder %s918_s25, %s1245_s6 }
  0x3d   : > { %369 = vmatpush.msra.mxu1 %v346_v7  ;;  %713 = vmatmul.msk.f32.vlgmr.msra.gmra.mxu0 %vm322_vm0, %v313_v8  ;;  %p920_p1 = scmp.ne.s32.totalorder %s918_s25, %s919_s13 }
  0x3e   : > { %714 = vmatmul.msk.f32.vlgmr.msra.gmra.mxu1 %vm322_vm0, %v313_v8 }
  0x3f   : > { %p921_p3 = pnand %p920_p1, %p1120_p4 }
  0x41   : > { %p922_p5 = pneg %p921_p3 }
  0xba   : > { %v343_v11 = vpop.f32.mrf.mxu0 }
  0xbb   : > { %v371_v12 = vpop.f32.mrf.mxu1  ;;  %v344_v13 = vadd.f32 %v811_v9, %v343_v11 }
  0xbc   : > { %v372_v14 = vadd.f32 %v812_v10, %v371_v12 }
  0xbd   : > { %453 = vrot.lane.b32.xlu2 %v344_v13, %s1012_s18  ;;  %374 = vxpose.xlu0.b32.start.end [1/1] (short) (narrow) %v344_v13, 8 }
  0xbe   : > { %408 = vst.msk [vmem:[%s1170_s15] sm:$0xff] %vm406_vm1, %v372_v14  ;;  %448 = vrot.lane.b32.xlu1 %v372_v14, %s1011_s17 }
  0xc6   : > { %495 = vrot.lane.b32.xlu1 %v344_v13, %s1013_s8 }
 0x117   : > { %v454_v15 = vpop.permute.xlu2 %453 }
 0x118   : > { %456 = vxpose.xlu2.b32.start.end [1/1] (short) (narrow) %v454_v15, 8 }
 0x12b   : > { %410 = vrot.lane.b32.xlu0 %v344_v13, %s1011_s17  ;;  %s923_s17 = scalar_lea.hbm %s1245_s6, 64 }
 0x12c   : > { %p925_p7 = scmp.lt.s32.totalorder %s923_s17, %s919_s13 }
 0x12e   : > { %p926_p8 = por %p925_p7, %p924_p12 }
 0x130   : > { %v449_v16 = vpop.permute.xlu1 %448  ;;  %p927_p9 = pnand %p926_p8, %p922_p5 }
 0x131   : > { %716 = vst.msk [vmem:[%s1170_s15 + $0x8] sm:$0xff] %vm406_vm1, %v449_v16 }
 0x133   : > { %532 = vrot.lane.b32.xlu0 %v372_v14, %s1013_s8 }
 0x138   : > { %v496_v19 = vpop.permute.xlu1 %495 }
 0x161   : > { %v390_v17 = vpop.trf.xlu0 }
 0x162   : > { %407 = vst.msk [vmem:[%s1176_s9] sm:$0xff] %vm406_vm1, %v390_v17 }
 0x181   : > { %490 = vrot.lane.b32.xlu2 %v372_v14, %s1012_s18 }
 0x19d   : > { %v411_v18 = vpop.permute.xlu0 %410 }
 0x19e   : > { %413 = vxpose.xlu1.b32.start.end [1/1] (short) (narrow) %v411_v18, 8 }
 0x1a5   : > { %v533_v20 = vpop.permute.xlu0 %532 }
 0x1a6   : > { %720 = vst.msk [vmem:[%s1170_s15 + $0x18] sm:$0xff] %vm406_vm1, %v533_v20  ;;  %498 = vxpose.xlu1.b32.start.end [1/1] (short) (narrow) %v496_v19, 8 }
 0x1b1   : > { %v472_v21 = vpop.trf.xlu2 }
 0x1b2   : > { %717 = vst.msk [vmem:[%s1176_s9 + $0x10] sm:$0xff] %vm406_vm1, %v472_v21 }
 0x1db   : > { %v491_v22 = vpop.permute.xlu2 %490 }
 0x1dc   : > { %718 = vst.msk [vmem:[%s1170_s15 + $0x10] sm:$0xff] %vm406_vm1, %v491_v22 }
 0x1dd   : > { %930 = shalt.err (!%p927_p9)
}
 0x1de   : > { %s1014_s15 = smov 128   ;;  %s1015_s20 = smov 8  }
 0x1df   : > { %742 = dma.vmem_to_hbm [thread:$0]  (%p1120_p4), %s573_s7, 512, %s575_s1, %s543_s29, %s1014_s15, %s1014_s15, %s1015_s20  }
 0x1e0   : > { %s554_s25 = scalar_lea.hbm %s1244_s5, %s729_s10  ;;  %s555_s13 = sshll.u32 %s1176_s9, 4  ;;  %s556_s13 = int_to_ptr.vmem [resolvable:$true] %s555_s13 }
 0x1e1   : > { %s557_s28 = sshll.u32 %s554_s25, 4  ;;  %s538_s14 = scalar_lea.sflag [#allocation4], %s1151_s26  ;;  %s558_s28 = int_to_ptr.hbm [resolvable:$true] %s557_s28 }
 0x1e2   : > { %s945_s17 = sshra.s32 %s558_s28, 4  ;;  %s951_s29 = scalar_lea.hbm %s1244_s5, 64  ;;  %s946_s17 = int_to_ptr.hbm [resolvable:$true] %s945_s17 }
 0x1e3   : > { %s947_s18 = scalar_lea.hbm %s946_s17, 32  ;;  %p952_p0 = scmp.lt.s32.totalorder %s946_s17, %s1244_s5 }
 0x1e4   : > { %p948_p10 = scmp.ne.s32.totalorder %s946_s17, %s947_s18  ;;  %p953_p2 = scmp.lt.s32.totalorder %s951_s29, %s947_s18 }
 0x1e6   : > { %p949_p13 = pnand %p948_p10, %p1120_p4  ;;  %p954_p1 = por %p953_p2, %p952_p0 }
 0x1e8   : > { %p950_p11 = pneg %p949_p13 }
 0x1ea   : > { %p955_p3 = pnand %p954_p1, %p950_p11 }
 0x242   : > { %v429_v23 = vpop.trf.xlu1 }
 0x243   : > { %715 = vst.msk [vmem:[%s1176_s9 + $0x8] sm:$0xff] %vm406_vm1, %v429_v23 }
 0x24a   : > { %v514_v24 = vpop.trf.xlu1 }
 0x24b   : > { %719 = vst.msk [vmem:[%s1176_s9 + $0x18] sm:$0xff] %vm406_vm1, %v514_v24 }
 0x24c   : > { %958 = shalt.err (!%p955_p3)
}
 0x24d   : > { %741 = dma.vmem_to_hbm [thread:$0]  (%p1120_p4), %s556_s13, 512, %s558_s28, %s538_s14, %s1014_s15, %s1014_s15, %s1015_s20  }
 0x24e PF: > { %s589_s26 = sand.u32 1, %s993_s21   ;;  %p1254_p5 = scmp.ge.s32.totalorder %s1005_s24, 2 }
 0x24f   : > { %s590_s9 = scalar_lea.sflag [#allocation4], %s589_s26 }
 0x250   : > { %p757_p12 = pnand %p1254_p5, %p1124_p6 }
 0x252   : > { %p758_p7 = pneg %p757_p12 }
 0x254   : > { %984 = dma.done.wait (%p758_p7), %s590_s9, 512  }
 0x255   : > { %986 = vsyncadd (%p758_p7), %s590_s9, 4294966784  ;;  %s600_s11 = scalar_lea.sflag [#allocation10], %s589_s26 }
 0x256   : > { %988 = dma.done.wait (%p758_p7), %s600_s11, 512  }
 0x257   : > { %990 = vsyncadd (%p758_p7), %s600_s11, 4294966784  ;;  %p24_p4 = scmp.ge.s32.totalorder %s1094_s16, 4   ;;  %s1255_s21 = smov %s997_s22 }
 0x258   : > { %s1256_s22 = smov %s1001_s23  ;;  %s1257_s23 = smov %s1105_s19 }
 0x259   : > { %s1258_s24 = smov %s1094_s16  ;;  %26 = sbr.rel (!%p24_p4) target bundleno = 10 (0xa), region = 116 }
 0x25e   :  { %606 = vsyncpa [#allocation3], 1 }
 0x25f   :  { %608 = vsyncpa [#allocation3 + $0x1], 1 }
 0x260   :  { %609 = vsyncpa [#allocation6], 1 }
 0x261   :  { %610 = vsyncpa [#allocation4], 1 }
 0x262   :  { %612 = vsyncpa [#allocation4 + $0x1], 1 }
 0x263   :  { %613 = vsyncpa [#allocation10], 1 }
 0x264   :  { %615 = vsyncpa [#allocation10 + $0x1], 1 }

</bundles_post_ra>
